<compile_context>
chip_gen: v6e
topology: v6e:2x2x1
jax: 0.10.0
libtpu: 0.0.40
codegen_flags: <defaults>
</compile_context>

<pallas_src>
import functools

import jax
import jax.numpy as jnp
from jax.experimental import pallas as pl
from jax.experimental.pallas import tpu as pltpu


def _round_up(x, m):
    return ((x + m - 1) // m) * m


# ----------------------------- Pallas kernel ---------------------------------

def _linear_act_kernel(x_ref, w_ref, b_ref, o_ref, *, act, neg_slope):
    # MXU matmul: bf16 operands, f32 accumulation.
    y = jnp.dot(x_ref[...].astype(jnp.bfloat16), w_ref[...],
                preferred_element_type=jnp.float32)
    # Fused epilogue in f32: bias + optional LeakyReLU(neg_slope).
    y = y + b_ref[...]
    if act == "leaky_relu":
        y = jnp.where(y >= 0.0, y, neg_slope * y)
    o_ref[...] = y


def linear_act(x, w, b, *, act="none", neg_slope=0.2, tm=512, tn=512,
               vmem_limit_bytes=32 * 1024 * 1024):
    """y = act(x @ w + b).  x:(M,K) f32, w:(K,N) f32, b:(N,) f32 -> (M,N) f32."""
    M, K = x.shape
    Kw, N = w.shape
    assert K == Kw, (K, Kw)

    # Tile sizes: (8,128)-aligned, shrink for small layers, never one giant tile
    # spanning an un-padded non-divisible dimension.
    tm = min(tm, _round_up(M, 8))
    tn = min(tn, _round_up(N, 128))
    Mp = _round_up(M, tm)
    Np = _round_up(N, tn)

    if Mp != M:
        x = jnp.pad(x, ((0, Mp - M), (0, 0)))
    w_bf16 = w.astype(jnp.bfloat16)          # halve K-side weight DMA bytes
    if Np != N:
        w_bf16 = jnp.pad(w_bf16, ((0, 0), (0, Np - N)))
        b = jnp.pad(b, (0, Np - N))
    b2 = b.reshape(1, Np).astype(jnp.float32)

    kern = functools.partial(_linear_act_kernel, act=act, neg_slope=neg_slope)
    out = pl.pallas_call(
        kern,
        out_shape=jax.ShapeDtypeStruct((Mp, Np), jnp.float32),
        grid_spec=pltpu.PrefetchScalarGridSpec(
            num_scalar_prefetch=0,
            grid=(Mp // tm, Np // tn),
            in_specs=[pl.BlockSpec((tm, K), lambda i, j: (i, 0)),
                      pl.BlockSpec((K, tn), lambda i, j: (0, j)),
                      pl.BlockSpec((1, tn), lambda i, j: (0, j))],
            out_specs=pl.BlockSpec((tm, tn), lambda i, j: (i, j))),
        compiler_params=pltpu.CompilerParams(
            dimension_semantics=("parallel", "parallel"),
            vmem_limit_bytes=vmem_limit_bytes),
    )(x, w_bf16, b2)

    if Mp != M or Np != N:
        out = out[:M, :N]
    return out


# ----------------------------- parameters ------------------------------------

def init_linear_params(key, in_dim, out_dim):
    # torch nn.Linear default init: U(-1/sqrt(fan_in), 1/sqrt(fan_in)) for W and b.
    kw, kb = jax.random.split(key)
    bound = 1.0 / float(in_dim) ** 0.5
    # stored as (in, out) so the kernel computes x @ w directly (== x @ W_torch.T)
    w = jax.random.uniform(kw, (in_dim, out_dim), jnp.float32, -bound, bound)
    b = jax.random.uniform(kb, (out_dim,), jnp.float32, -bound, bound)
    return {"w": w, "b": b}


def build_net_cls_dc_params(key, in_dim, out_dim, bottle_neck_dim=None):
    if bottle_neck_dim is None:
        return {"fc": init_linear_params(key, in_dim, out_dim)}
    k1, k2, k3 = jax.random.split(key, 3)
    return {
        "fc1": init_linear_params(k1, in_dim, bottle_neck_dim),
        "fc2": init_linear_params(k2, bottle_neck_dim, bottle_neck_dim),
        "fc3": init_linear_params(k3, bottle_neck_dim, out_dim),
    }


# ------------------------------ forward ---------------------------------------

def net_cls_dc_forward(x, params):
    """Forward pass of Net_CLS_DC."""
    if "fc" in params:  # bottle_neck_dim is None: single Linear
        return linear_act(x, params["fc"]["w"], params["fc"]["b"], act="none")
    # Linear -> LeakyReLU(0.2) -> Linear -> LeakyReLU(0.2) -> Linear
    x = linear_act(x, params["fc1"]["w"], params["fc1"]["b"],
                   act="leaky_relu", neg_slope=0.2)
    x = linear_act(x, params["fc2"]["w"], params["fc2"]["b"],
                   act="leaky_relu", neg_slope=0.2)
    x = linear_act(x, params["fc3"]["w"], params["fc3"]["b"], act="none")
    return x


def _reference_forward(x, params):
    """Pure-JAX reference (f32) for a tolerance check."""
    def leaky(v):
        return jnp.where(v >= 0.0, v, 0.2 * v)
    if "fc" in params:
        return x @ params["fc"]["w"] + params["fc"]["b"]
    x = leaky(x @ params["fc1"]["w"] + params["fc1"]["b"])
    x = leaky(x @ params["fc2"]["w"] + params["fc2"]["b"])
    return x @ params["fc3"]["w"] + params["fc3"]["b"]


if __name__ == "__main__":
    key = jax.random.PRNGKey(0)
    kx, kp_bn, kp_plain = jax.random.split(key, 3)

    batch, in_dim, bottle, out_dim = 16, 256, 128, 32
    x = jax.random.normal(kx, (batch, in_dim), jnp.float32)

    params_bn = build_net_cls_dc_params(kp_bn, in_dim, out_dim,
                                        bottle_neck_dim=bottle)
    params_plain = build_net_cls_dc_params(kp_plain, in_dim, out_dim,
                                           bottle_neck_dim=None)

    fwd = jax.jit(net_cls_dc_forward)

    out_bn = jax.block_until_ready(fwd(x, params_bn))
    out_plain = jax.block_until_ready(fwd(x, params_plain))

    assert out_bn.shape == (batch, out_dim), out_bn.shape
    assert out_plain.shape == (batch, out_dim), out_plain.shape
    assert bool(jnp.all(jnp.isfinite(out_bn)))
    assert bool(jnp.all(jnp.isfinite(out_plain)))

    # tolerance check vs f32 reference (bf16 MXU matmul => loose tolerance)
    ref_bn = _reference_forward(x, params_bn)
    ref_plain = _reference_forward(x, params_plain)
    assert bool(jnp.allclose(out_bn, ref_bn, atol=1e-1, rtol=1e-1))
    assert bool(jnp.allclose(out_plain, ref_plain, atol=1e-1, rtol=1e-1))

    print("KERNEL_OK")
</pallas_src>

<mosaic_0001>
module attributes {stable_mosaic.version = 11 : i64} {
  func.func @_linear_act_kernel(%arg0: i32, %arg1: i32, %arg2: memref<16x128xf32, #tpu.memory_space<vmem>>, %arg3: memref<128x128xbf16, #tpu.memory_space<vmem>>, %arg4: memref<1x128xf32, #tpu.memory_space<vmem>>, %arg5: memref<16x128xf32, #tpu.memory_space<vmem>>) attributes {dimension_semantics = [#tpu.dimension_semantics<parallel>, #tpu.dimension_semantics<parallel>], iteration_bounds = array<i64: 1, 1>, scalar_prefetch = 0 : i64, scratch_operands = 0 : i64, tpu.core_type = #tpu.core_type<tc>, window_params = [{transform_indices = @transform_0, window_bounds = array<i64: 16, 128>}, {transform_indices = @transform_1, window_bounds = array<i64: 128, 128>}, {transform_indices = @transform_2, window_bounds = array<i64: 1, 128>}, {transform_indices = @transform_3, window_bounds = array<i64: 16, 128>}]} {
    %c0 = arith.constant 0 : index
    %c0_0 = arith.constant 0 : index
    %0 = vector.load %arg2[%c0, %c0_0] : memref<16x128xf32, #tpu.memory_space<vmem>>, vector<16x128xf32>
    %1 = arith.truncf %0 : vector<16x128xf32> to vector<16x128xbf16>
    %c0_1 = arith.constant 0 : index
    %c0_2 = arith.constant 0 : index
    %2 = vector.load %arg3[%c0_1, %c0_2] : memref<128x128xbf16, #tpu.memory_space<vmem>>, vector<128x128xbf16>
    %cst = arith.constant dense<0.000000e+00> : vector<16x128xf32>
    %3 = tpu.matmul %1, %2, %cst {dimension_numbers = #tpu.dot_dimension_numbers<[1], [0], [0], [1], [0, 0, 1, 1], [], []>} : vector<16x128xbf16>, vector<128x128xbf16>, vector<16x128xf32> -> vector<16x128xf32>
    %c0_3 = arith.constant 0 : index
    %c0_4 = arith.constant 0 : index
    %4 = vector.load %arg4[%c0_3, %c0_4] : memref<1x128xf32, #tpu.memory_space<vmem>>, vector<1x128xf32>
    %5 = vector.broadcast %4 : vector<1x128xf32> to vector<16x128xf32>
    %6 = arith.addf %3, %5 : vector<16x128xf32>
    %cst_5 = arith.constant 0.000000e+00 : f32
    %7 = vector.broadcast %cst_5 : f32 to vector<16x128xf32>
    %8 = arith.cmpf oge, %6, %7 : vector<16x128xf32>
    %cst_6 = arith.constant 2.000000e-01 : f32
    %9 = vector.broadcast %cst_6 : f32 to vector<16x128xf32>
    %10 = arith.mulf %9, %6 : vector<16x128xf32>
    %11 = arith.select %8, %6, %10 : vector<16x128xi1>, vector<16x128xf32>
    %c0_7 = arith.constant 0 : index
    %c0_8 = arith.constant 0 : index
    %12 = vector.load %arg5[%c0_7, %c0_8] : memref<16x128xf32, #tpu.memory_space<vmem>>, vector<16x128xf32>
    tpu.vector_store %arg5[%c0_7, %c0_8], %11 {strides = array<i32>} : memref<16x128xf32, #tpu.memory_space<vmem>>, vector<16x128xf32>,
    return
  }
  func.func @transform_0(%arg0: i32, %arg1: i32) -> (i32, i32) {
    %c0_i32 = arith.constant 0 : i32
    %c0_i32_0 = arith.constant 0 : i32
    return %arg0, %c0_i32 : i32, i32
  }
  func.func @transform_1(%arg0: i32, %arg1: i32) -> (i32, i32) {
    %c0_i32 = arith.constant 0 : i32
    %c0_i32_0 = arith.constant 0 : i32
    return %c0_i32, %arg1 : i32, i32
  }
  func.func @transform_2(%arg0: i32, %arg1: i32) -> (i32, i32) {
    %c0_i32 = arith.constant 0 : i32
    %c0_i32_0 = arith.constant 0 : i32
    return %c0_i32, %arg1 : i32, i32
  }
  func.func @transform_3(%arg0: i32, %arg1: i32) -> (i32, i32) {
    %c0_i32 = arith.constant 0 : i32
    return %arg0, %arg1 : i32, i32
  }
}

module attributes {stable_mosaic.version = 11 : i64} {
  func.func @_linear_act_kernel(%arg0: i32, %arg1: i32, %arg2: memref<16x256xf32, #tpu.memory_space<vmem>>, %arg3: memref<256x128xbf16, #tpu.memory_space<vmem>>, %arg4: memref<1x128xf32, #tpu.memory_space<vmem>>, %arg5: memref<16x128xf32, #tpu.memory_space<vmem>>) attributes {dimension_semantics = [#tpu.dimension_semantics<parallel>, #tpu.dimension_semantics<parallel>], iteration_bounds = array<i64: 1, 1>, scalar_prefetch = 0 : i64, scratch_operands = 0 : i64, tpu.core_type = #tpu.core_type<tc>, window_params = [{transform_indices = @transform_0, window_bounds = array<i64: 16, 256>}, {transform_indices = @transform_1, window_bounds = array<i64: 256, 128>}, {transform_indices = @transform_2, window_bounds = array<i64: 1, 128>}, {transform_indices = @transform_3, window_bounds = array<i64: 16, 128>}]} {
    %c0 = arith.constant 0 : index
    %c0_0 = arith.constant 0 : index
    %0 = vector.load %arg2[%c0, %c0_0] : memref<16x256xf32, #tpu.memory_space<vmem>>, vector<16x256xf32>
    %1 = arith.truncf %0 : vector<16x256xf32> to vector<16x256xbf16>
    %c0_1 = arith.constant 0 : index
    %c0_2 = arith.constant 0 : index
    %2 = vector.load %arg3[%c0_1, %c0_2] : memref<256x128xbf16, #tpu.memory_space<vmem>>, vector<256x128xbf16>
    %cst = arith.constant dense<0.000000e+00> : vector<16x128xf32>
    %3 = tpu.matmul %1, %2, %cst {dimension_numbers = #tpu.dot_dimension_numbers<[1], [0], [0], [1], [0, 0, 1, 1], [], []>} : vector<16x256xbf16>, vector<256x128xbf16>, vector<16x128xf32> -> vector<16x128xf32>
    %c0_3 = arith.constant 0 : index
    %c0_4 = arith.constant 0 : index
    %4 = vector.load %arg4[%c0_3, %c0_4] : memref<1x128xf32, #tpu.memory_space<vmem>>, vector<1x128xf32>
    %5 = vector.broadcast %4 : vector<1x128xf32> to vector<16x128xf32>
    %6 = arith.addf %3, %5 : vector<16x128xf32>
    %cst_5 = arith.constant 0.000000e+00 : f32
    %7 = vector.broadcast %cst_5 : f32 to vector<16x128xf32>
    %8 = arith.cmpf oge, %6, %7 : vector<16x128xf32>
    %cst_6 = arith.constant 2.000000e-01 : f32
    %9 = vector.broadcast %cst_6 : f32 to vector<16x128xf32>
    %10 = arith.mulf %9, %6 : vector<16x128xf32>
    %11 = arith.select %8, %6, %10 : vector<16x128xi1>, vector<16x128xf32>
    %c0_7 = arith.constant 0 : index
    %c0_8 = arith.constant 0 : index
    %12 = vector.load %arg5[%c0_7, %c0_8] : memref<16x128xf32, #tpu.memory_space<vmem>>, vector<16x128xf32>
    tpu.vector_store %arg5[%c0_7, %c0_8], %11 {strides = array<i32>} : memref<16x128xf32, #tpu.memory_space<vmem>>, vector<16x128xf32>,
    return
  }
  func.func @transform_0(%arg0: i32, %arg1: i32) -> (i32, i32) {
    %c0_i32 = arith.constant 0 : i32
    %c0_i32_0 = arith.constant 0 : i32
    return %arg0, %c0_i32 : i32, i32
  }
  func.func @transform_1(%arg0: i32, %arg1: i32) -> (i32, i32) {
    %c0_i32 = arith.constant 0 : i32
    %c0_i32_0 = arith.constant 0 : i32
    return %c0_i32, %arg1 : i32, i32
  }
  func.func @transform_2(%arg0: i32, %arg1: i32) -> (i32, i32) {
    %c0_i32 = arith.constant 0 : i32
    %c0_i32_0 = arith.constant 0 : i32
    return %c0_i32, %arg1 : i32, i32
  }
  func.func @transform_3(%arg0: i32, %arg1: i32) -> (i32, i32) {
    %c0_i32 = arith.constant 0 : i32
    return %arg0, %arg1 : i32, i32
  }
}

module attributes {stable_mosaic.version = 11 : i64} {
  func.func @_linear_act_kernel(%arg0: i32, %arg1: i32, %arg2: memref<16x128xf32, #tpu.memory_space<vmem>>, %arg3: memref<128x128xbf16, #tpu.memory_space<vmem>>, %arg4: memref<1x128xf32, #tpu.memory_space<vmem>>, %arg5: memref<16x128xf32, #tpu.memory_space<vmem>>) attributes {dimension_semantics = [#tpu.dimension_semantics<parallel>, #tpu.dimension_semantics<parallel>], iteration_bounds = array<i64: 1, 1>, scalar_prefetch = 0 : i64, scratch_operands = 0 : i64, tpu.core_type = #tpu.core_type<tc>, window_params = [{transform_indices = @transform_0, window_bounds = array<i64: 16, 128>}, {transform_indices = @transform_1, window_bounds = array<i64: 128, 128>}, {transform_indices = @transform_2, window_bounds = array<i64: 1, 128>}, {transform_indices = @transform_3, window_bounds = array<i64: 16, 128>}]} {
    %c0 = arith.constant 0 : index
    %c0_0 = arith.constant 0 : index
    %0 = vector.load %arg2[%c0, %c0_0] : memref<16x128xf32, #tpu.memory_space<vmem>>, vector<16x128xf32>
    %1 = arith.truncf %0 : vector<16x128xf32> to vector<16x128xbf16>
    %c0_1 = arith.constant 0 : index
    %c0_2 = arith.constant 0 : index
    %2 = vector.load %arg3[%c0_1, %c0_2] : memref<128x128xbf16, #tpu.memory_space<vmem>>, vector<128x128xbf16>
    %cst = arith.constant dense<0.000000e+00> : vector<16x128xf32>
    %3 = tpu.matmul %1, %2, %cst {dimension_numbers = #tpu.dot_dimension_numbers<[1], [0], [0], [1], [0, 0, 1, 1], [], []>} : vector<16x128xbf16>, vector<128x128xbf16>, vector<16x128xf32> -> vector<16x128xf32>
    %c0_3 = arith.constant 0 : index
    %c0_4 = arith.constant 0 : index
    %4 = vector.load %arg4[%c0_3, %c0_4] : memref<1x128xf32, #tpu.memory_space<vmem>>, vector<1x128xf32>
    %5 = vector.broadcast %4 : vector<1x128xf32> to vector<16x128xf32>
    %6 = arith.addf %3, %5 : vector<16x128xf32>
    %c0_5 = arith.constant 0 : index
    %c0_6 = arith.constant 0 : index
    %7 = vector.load %arg5[%c0_5, %c0_6] : memref<16x128xf32, #tpu.memory_space<vmem>>, vector<16x128xf32>
    tpu.vector_store %arg5[%c0_5, %c0_6], %6 {strides = array<i32>} : memref<16x128xf32, #tpu.memory_space<vmem>>, vector<16x128xf32>,
    return
  }
  func.func @transform_0(%arg0: i32, %arg1: i32) -> (i32, i32) {
    %c0_i32 = arith.constant 0 : i32
    %c0_i32_0 = arith.constant 0 : i32
    return %arg0, %c0_i32 : i32, i32
  }
  func.func @transform_1(%arg0: i32, %arg1: i32) -> (i32, i32) {
    %c0_i32 = arith.constant 0 : i32
    %c0_i32_0 = arith.constant 0 : i32
    return %c0_i32, %arg1 : i32, i32
  }
  func.func @transform_2(%arg0: i32, %arg1: i32) -> (i32, i32) {
    %c0_i32 = arith.constant 0 : i32
    %c0_i32_0 = arith.constant 0 : i32
    return %c0_i32, %arg1 : i32, i32
  }
  func.func @transform_3(%arg0: i32, %arg1: i32) -> (i32, i32) {
    %c0_i32 = arith.constant 0 : i32
    return %arg0, %arg1 : i32, i32
  }
}

</mosaic_0001>

<bundles_post_ra>
// kernel: net_cls_dc_forward.4
= control target key start
LH: loop header
LB: loop body
LE: loop exit
PB: predicated region body
PF: predicated region fallthrough
CT: control target
= control target key end

     0   :  { %v190_v0 = vmov 0.0   ;;  %vm191_vm0 = vmmov 0   ;;  %s251_s1 = inlined_call_operand.vmem [shape: bf16[128,128], index: 1, kind: input, shape index: {}]   ;;  %s252_s0 = inlined_call_operand.vmem [shape: f32[16,128], index: 0, kind: input, shape index: {}]   ;;  %s253_s2 = inlined_call_operand.vmem [shape: f32[1,128], index: 2, kind: input, shape index: {}]   ;;  %s254_s3 = inlined_call_operand.vmem [shape: f32[16,128], index: 3, kind: output, shape index: {}]  }
   0x1   :  { %160 = vmatprep.subr.bf16.mxu0 %v190_v0  ;;  %v182_v1 = vld [vmem:[%s251_s1 + $0x38] sm:$0xff]   ;;  %176 = vmatprep.mubr.msk.bf16.mxu0 %vm191_vm0, %v190_v0  ;;  %v183_v2 = vld [vmem:[%s251_s1 + $0x30] sm:$0xff]   ;;  %v184_v3 = vld [vmem:[%s251_s1 + $0x28] sm:$0xff]  }
   0x2   :  { %161 = vmatpush3.bf16.msra.mxu0 %v182_v1  ;;  %v185_v4 = vld [vmem:[%s251_s1 + $0x20] sm:$0xff]   ;;  %v186_v5 = vld [vmem:[%s251_s1 + $0x18] sm:$0xff]   ;;  %v187_v6 = vld [vmem:[%s251_s1 + $0x10] sm:$0xff]  }
   0x3   :  { %162 = vmatprep.subr.bf16.mxu0 %v190_v0  ;;  %v188_v7 = vld [vmem:[%s251_s1 + $0x8] sm:$0xff]   ;;  %v189_v8 = vld [vmem:[%s251_s1] sm:$0xff]  }
   0x4   :  { %v15_v9 = vld [vmem:[%s252_s0] sm:$0xff]  ;;  %v16_v10 = vld [vmem:[%s252_s0 + $0x8] sm:$0xff] }
   0x5   :  { %v17_v11 = vpack.c.bf16 %v16_v10, %v15_v9  ;;  %v142_v12 = vld [vmem:[%s253_s2] ss:$0 sm:$0xff] }
   0x6   :  { %163 = vmatpush3.bf16.msra.mxu0 %v183_v2 }
   0x7   :  { %164 = vmatprep.subr.bf16.mxu0 %v190_v0 }
   0xa   :  { %165 = vmatpush3.bf16.msra.mxu0 %v184_v3 }
   0xb   :  { %166 = vmatprep.subr.bf16.mxu0 %v190_v0 }
   0xe   :  { %167 = vmatpush3.bf16.msra.mxu0 %v185_v4 }
   0xf   :  { %168 = vmatprep.subr.bf16.mxu0 %v190_v0 }
  0x12   :  { %169 = vmatpush3.bf16.msra.mxu0 %v186_v5 }
  0x13   :  { %170 = vmatprep.subr.bf16.mxu0 %v190_v0 }
  0x16   :  { %171 = vmatpush3.bf16.msra.mxu0 %v187_v6 }
  0x17   :  { %172 = vmatprep.subr.bf16.mxu0 %v190_v0 }
  0x1a   :  { %173 = vmatpush3.bf16.msra.mxu0 %v188_v7 }
  0x1b   :  { %174 = vmatprep.subr.bf16.mxu0 %v190_v0 }
  0x1e   :  { %175 = vmatpush3.bf16.msra.mxu0 %v189_v8 }
  0x21   :  { %177 = vmatmul.mubr.bf16.vlgmr.msra.gmra.mxu0 %v17_v11 }
  0xe1   :  { %v123_v13 = vpop.f32.mrf.mxu0 }
  0xe2   :  { %v124_v14 = vadd.f32 %v142_v12, %v123_v13 }
  0xe3   :  { %v178_v15 = vpop.f32.mrf.mxu0 }
  0xe4   :  { %vm130_vm1 = vcmp.ge.f32.partialorder %v124_v14, 0.0  ;;  %v132_v16 = vmul.f32 0.2, %v124_v14 }
  0xe5   :  { %v126_v17 = vpop.f32.mrf.mxu0 }
  0xe6   :  { %v134_v18 = vsel %vm130_vm1, %v124_v14, %v132_v16  ;;  %v127_v19 = vadd.f32 %v142_v12, %v126_v17 }
  0xe7   :  { %136 = vst [vmem:[%s254_s3] sm:$0xff] %v134_v18  ;;  %v179_v20 = vpop.f32.mrf.mxu0 }
  0xe8   :  { %vm131_vm2 = vcmp.ge.f32.partialorder %v127_v19, 0.0  ;;  %v133_v21 = vmul.f32 0.2, %v127_v19 }
  0xea   :  { %v135_v22 = vsel %vm131_vm2, %v127_v19, %v133_v21 }
  0xeb   :  { %137 = vst [vmem:[%s254_s3 + $0x8] sm:$0xff] %v135_v22 }

// kernel: net_cls_dc_forward.3
= control target key start
LH: loop header
LB: loop body
LE: loop exit
PB: predicated region body
PF: predicated region fallthrough
CT: control target
= control target key end

     0   :  { %s353_s1 = inlined_call_operand.vmem [shape: bf16[256,128], index: 1, kind: input, shape index: {}]   ;;  %s354_s0 = inlined_call_operand.vmem [shape: f32[16,256], index: 0, kind: input, shape index: {}]   ;;  %s355_s2 = inlined_call_operand.vmem [shape: f32[1,128], index: 2, kind: input, shape index: {}]   ;;  %s356_s3 = inlined_call_operand.vmem [shape: f32[16,128], index: 3, kind: output, shape index: {}]  }
   0x1   :  { %v248_v0 = vld [vmem:[%s353_s1 + $0x78] sm:$0xff]   ;;  %v250_v2 = vld [vmem:[%s353_s1 + $0x70] sm:$0xff]   ;;  %v252_v4 = vld [vmem:[%s353_s1 + $0x68] sm:$0xff]  }
   0x2   :  { %v249_v1 = vld [vmem:[%s353_s1 + $0x38] sm:$0xff]   ;;  %226 = vmatprep.subr.bf16.mxu0 %v248_v0  ;;  %v251_v3 = vld [vmem:[%s353_s1 + $0x30] sm:$0xff]   ;;  %v253_v5 = vld [vmem:[%s353_s1 + $0x28] sm:$0xff]  }
   0x3   :  { %227 = vmatpush3.bf16.msra.mxu0 %v249_v1  ;;  %v254_v6 = vld [vmem:[%s353_s1 + $0x60] sm:$0xff]   ;;  %v256_v8 = vld [vmem:[%s353_s1 + $0x58] sm:$0xff]   ;;  %v258_v10 = vld [vmem:[%s353_s1 + $0x50] sm:$0xff]  }
   0x4   :  { %228 = vmatprep.subr.bf16.mxu0 %v250_v2  ;;  %v255_v7 = vld [vmem:[%s353_s1 + $0x20] sm:$0xff]   ;;  %v257_v9 = vld [vmem:[%s353_s1 + $0x18] sm:$0xff]   ;;  %v16_v11 = vld [vmem:[%s354_s0 + $0x8] sm:$0xff] }
   0x5   :  { %v18_v12 = vld [vmem:[%s354_s0 + $0x18] sm:$0xff]  ;;  %v259_v14 = vld [vmem:[%s353_s1 + $0x10] sm:$0xff]   ;;  %v260_v15 = vld [vmem:[%s353_s1 + $0x48] sm:$0xff]  }
   0x6   :  { %v20_v13 = vpack.c.bf16 %v18_v12, %v16_v11  ;;  %v261_v16 = vld [vmem:[%s353_s1 + $0x8] sm:$0xff]   ;;  %v262_v17 = vld [vmem:[%s353_s1 + $0x40] sm:$0xff]   ;;  %v17_v20 = vld [vmem:[%s354_s0 + $0x10] sm:$0xff] }
   0x7   :  { %229 = vmatpush3.bf16.msra.mxu0 %v251_v3  ;;  %v263_v18 = vld [vmem:[%s353_s1] sm:$0xff]  }
   0x8   :  { %230 = vmatprep.subr.bf16.mxu0 %v252_v4  ;;  %188 = vmatprep.mubr.bf16.mxu0 %v20_v13  ;;  %v15_v19 = vld [vmem:[%s354_s0] sm:$0xff] }
   0x9   :  { %v19_v21 = vpack.c.bf16 %v17_v20, %v15_v19  ;;  %v209_v23 = vld [vmem:[%s355_s2] ss:$0 sm:$0xff] }
   0xb   :  { %231 = vmatpush3.bf16.msra.mxu0 %v253_v5 }
   0xc   :  { %232 = vmatprep.subr.bf16.mxu0 %v254_v6 }
   0xf   :  { %233 = vmatpush3.bf16.msra.mxu0 %v255_v7 }
  0x10   :  { %234 = vmatprep.subr.bf16.mxu0 %v256_v8 }
  0x13   :  { %235 = vmatpush3.bf16.msra.mxu0 %v257_v9 }
  0x14   :  { %236 = vmatprep.subr.bf16.mxu0 %v258_v10 }
  0x17   :  { %237 = vmatpush3.bf16.msra.mxu0 %v259_v14 }
  0x18   :  { %238 = vmatprep.subr.bf16.mxu0 %v260_v15 }
  0x1b   :  { %239 = vmatpush3.bf16.msra.mxu0 %v261_v16 }
  0x1c   :  { %240 = vmatprep.subr.bf16.mxu0 %v262_v17 }
  0x1f   :  { %241 = vmatpush3.bf16.msra.mxu0 %v263_v18 }
  0x22   :  { %189 = vmatmul.mubr.bf16.vlgmr.msra.gmra.mxu0 %v19_v21 }
  0xe2   :  { %v242_v22 = vpop.f32.mrf.mxu0 }
  0xe4   :  { %v243_v24 = vpop.f32.mrf.mxu0 }
  0xe5   :  { %v244_v25 = vadd.f32 %v243_v24, %v242_v22 }
  0xe6   :  { %v245_v26 = vpop.f32.mrf.mxu0 }
  0xe7   :  { %v191_v27 = vadd.f32 %v244_v25, %v209_v23 }
  0xe8   :  { %v246_v28 = vpop.f32.mrf.mxu0 }
  0xe9   :  { %vm197_vm0 = vcmp.ge.f32.partialorder %v191_v27, 0.0  ;;  %v199_v29 = vmul.f32 0.2, %v191_v27  ;;  %v247_v30 = vadd.f32 %v246_v28, %v245_v26 }
  0xeb   :  { %v201_v31 = vsel %vm197_vm0, %v191_v27, %v199_v29  ;;  %v194_v32 = vadd.f32 %v247_v30, %v209_v23 }
  0xec   :  { %203 = vst [vmem:[%s356_s3] sm:$0xff] %v201_v31 }
  0xed   :  { %vm198_vm1 = vcmp.ge.f32.partialorder %v194_v32, 0.0  ;;  %v200_v33 = vmul.f32 0.2, %v194_v32 }
  0xef   :  { %v202_v34 = vsel %vm198_vm1, %v194_v32, %v200_v33 }
  0xf0   :  { %204 = vst [vmem:[%s356_s3 + $0x8] sm:$0xff] %v202_v34 }

// kernel: net_cls_dc_forward.5
= control target key start
LH: loop header
LB: loop body
LE: loop exit
PB: predicated region body
PF: predicated region fallthrough
CT: control target
= control target key end

     0   :  { %v222_v1 = vmov 0.0   ;;  %vm223_vm0 = vmmov 0   ;;  %s283_s0 = inlined_call_operand.vmem [shape: f32[16,128], index: 0, kind: input, shape index: {}]   ;;  %s284_s1 = inlined_call_operand.vmem [shape: bf16[128,128], index: 1, kind: input, shape index: {}]   ;;  %s285_s2 = inlined_call_operand.vmem [shape: f32[1,128], index: 2, kind: input, shape index: {}]   ;;  %s286_s3 = inlined_call_operand.hbm [shape: f32[16,128], index: 3, kind: output, shape index: {}]  }
   0x1   :  { %v192_v0 = vld [vmem:[%s284_s1 + $0x38] sm:$0xff]   ;;  %167 = vmatprep.subr.bf16.mxu0 %v222_v1  ;;  %v193_v2 = vld [vmem:[%s284_s1 + $0x30] sm:$0xff]   ;;  %183 = vmatprep.mubr.msk.bf16.mxu0 %vm223_vm0, %v222_v1  ;;  %v194_v3 = vld [vmem:[%s284_s1 + $0x28] sm:$0xff]  }
   0x2   :  { %168 = vmatpush3.bf16.msra.mxu0 %v192_v0 }
   0x3   :  { %169 = vmatprep.subr.bf16.mxu0 %v222_v1 }
   0x6   :  { %170 = vmatpush3.bf16.msra.mxu0 %v193_v2 }
   0x7   :  { %171 = vmatprep.subr.bf16.mxu0 %v222_v1 }
   0x8   :  { %8 = vsyncpa [#allocation3], 0  ;;  %v195_v4 = vld [vmem:[%s284_s1 + $0x20] sm:$0xff]   ;;  %v196_v5 = vld [vmem:[%s284_s1 + $0x18] sm:$0xff]   ;;  %s224_s7 = smov [#allocation2]  }
   0x9   :  { %v197_v6 = vld [vmem:[%s284_s1 + $0x10] sm:$0xff]   ;;  %v198_v7 = vld [vmem:[%s284_s1 + $0x8] sm:$0xff]   ;;  %v199_v8 = vld [vmem:[%s284_s1] sm:$0xff]   ;;  %s138_s1 = sshll.u32 %s224_s7, 4  ;;  %s139_s1 = int_to_ptr.vmem [resolvable:$true] %s138_s1 }
   0xa   :  { %172 = vmatpush3.bf16.msra.mxu0 %v194_v3  ;;  %v16_v9 = vld [vmem:[%s283_s0] sm:$0xff]  ;;  %v17_v10 = vld [vmem:[%s283_s0 + $0x8] sm:$0xff]  ;;  %s200_s0 = scalar_lea.vmem %s139_s1, 256  ;;  %p205_p1 = scmp.lt.s32.totalorder %s139_s1, %s139_s1 }
   0xb   :  { %173 = vmatprep.subr.bf16.mxu0 %v222_v1  ;;  %v18_v11 = vpack.c.bf16 %v17_v10, %v16_v9  ;;  %v149_v12 = vld [vmem:[%s285_s2] ss:$0 sm:$0xff]  ;;  %p201_p0 = scmp.ne.s32.totalorder %s139_s1, %s200_s0  ;;  %p206_p2 = scmp.lt.s32.totalorder %s200_s0, %s200_s0 }
   0xd   :  { %p207_p3 = por %p206_p2, %p205_p1 }
   0xe   :  { %174 = vmatpush3.bf16.msra.mxu0 %v195_v4 }
   0xf   :  { %175 = vmatprep.subr.bf16.mxu0 %v222_v1  ;;  %p208_p4 = pnand %p207_p3, %p201_p0 }
  0x12   :  { %176 = vmatpush3.bf16.msra.mxu0 %v196_v5 }
  0x13   :  { %177 = vmatprep.subr.bf16.mxu0 %v222_v1 }
  0x16   :  { %178 = vmatpush3.bf16.msra.mxu0 %v197_v6 }
  0x17   :  { %179 = vmatprep.subr.bf16.mxu0 %v222_v1 }
  0x1a   :  { %180 = vmatpush3.bf16.msra.mxu0 %v198_v7 }
  0x1b   :  { %181 = vmatprep.subr.bf16.mxu0 %v222_v1 }
  0x1e   :  { %182 = vmatpush3.bf16.msra.mxu0 %v199_v8 }
  0x21   :  { %184 = vmatmul.mubr.bf16.vlgmr.msra.gmra.mxu0 %v18_v11 }
  0xe1   :  { %v124_v13 = vpop.f32.mrf.mxu0 }
  0xe2   :  { %v125_v14 = vadd.f32 %v149_v12, %v124_v13 }
  0xe3   :  { %v185_v15 = vpop.f32.mrf.mxu0 }
  0xe4   :  { %131 = vst [vmem:[#allocation2] sm:$0xff] %v125_v14 }
  0xe5   :  { %v127_v16 = vpop.f32.mrf.mxu0 }
  0xe6   :  { %v128_v17 = vadd.f32 %v149_v12, %v127_v16 }
  0xe7   :  { %v186_v18 = vpop.f32.mrf.mxu0 }
  0xe8   :  { %132 = vst [vmem:[#allocation2 + $0x8] sm:$0xff] %v128_v17 }
  0xe9   :  { %211 = shalt.err (!%p208_p4)
}
  0xea   :  { %s225_s8 = smov 128   ;;  %s226_s2 = smov 8  }
  0xeb   :  { %144 = dma.vmem_to_hbm [thread:$0]  %s139_s1, 256, %s286_s3, [#allocation3], %s225_s8, %s225_s8, %s226_s2  }
  0xec   :  { %220 = dma.done.wait [#allocation3], 256  }
  0xed   :  { %221 = vsyncadd [#allocation3], 4294967040 }
  0xee   :  { %148 = vsyncpa [#allocation3], 1 }

</bundles_post_ra>
